<compile_context>
chip_gen: v6e
topology: v6e:2x2x1
jax: 0.10.0
libtpu: 0.0.40
codegen_flags: <defaults>
</compile_context>

<pallas_src>
import functools

import jax
import jax.numpy as jnp
from jax import lax
from jax.experimental import pallas as pl
from jax.experimental.pallas import tpu as pltpu

BN_EPS = 1e-5  # PyTorch BatchNorm1d default eps


def _round_up(v, m):
    return (v + m - 1) // m * m


def _vmem_budget():
    """Generation-aware scoped-VMEM budget (bytes)."""
    cap = 64 << 20
    try:
        cap = int(getattr(pltpu.get_tpu_info(), "vmem_capacity_bytes", cap))
    except Exception:
        pass
    if cap >= (96 << 20):      # v5e / v6e: 128 MiB physical VMEM
        return 96 << 20
    return 48 << 20            # v7x (64 MiB per TensorCore) or unknown


def _pick_row_tile(n_pad):
    """Large row blocks for the mem-bound elementwise / small-matmul passes."""
    for r in (2048, 1024, 512, 256, 128):
        if r <= n_pad and n_pad % r == 0:
            return r
    return n_pad


def _pick_tk(n_pad, tm, cout, budget):
    """Widest A tile (columns) that fits the VMEM budget with Y resident."""
    fixed = (2 * n_pad * cout * 2      # Y resident (worst case double-buffered)
             + 2 * tm * cout * 2       # bf16 H output block (double-buffered)
             + 2 * 2 * cout * 4        # stats output block
             + tm * cout * 4           # f32 accumulator scratch
             + (2 << 20))              # headroom
    for tk in (n_pad, 8192, 4096, 2048, 1024, 512, 256, 128):
        if tk > n_pad or n_pad % tk != 0:
            continue
        if fixed + 2 * tm * tk * 2 <= budget:
            return tk
    return 128


# ----------------------------------------------------------------------------
# Kernels
# ----------------------------------------------------------------------------
def spmm_stats_kernel(a_ref, y_ref, h_ref, stats_ref, acc_ref, *,
                      n_real, tm, tk):
    """Tiled H_tile = A_tile @ Y plus per-row-tile BN partial statistics.

    grid = (row_tiles [parallel], k_tiles [arbitrary, contraction])
      a_ref    : (tm, tk)        bf16  A tile
      y_ref    : (n_pad, Cout)   bf16  Y = X @ W^T, resident in VMEM
      h_ref    : (tm, Cout)      bf16  pre-BN activations for this row tile
      stats_ref: (1, 2, Cout)    f32   [sum(h), centered sum-of-squares]
      acc_ref  : (tm, Cout)      f32   VMEM accumulator
    """
    i = pl.program_id(0)
    k = pl.program_id(1)

    @pl.when(k == 0)
    def _():
        acc_ref[...] = jnp.zeros_like(acc_ref)

    # bf16 x bf16 MXU matmul, f32 accumulate; Y sliced in VMEM (no re-DMA).
    y_blk = y_ref[pl.ds(pl.multiple_of(k * tk, tk), tk), :]
    acc_ref[...] += jnp.dot(a_ref[...], y_blk,
                            preferred_element_type=jnp.float32)

    @pl.when(k == pl.num_programs(1) - 1)
    def _():
        h = acc_ref[...]
        h_ref[...] = h.astype(h_ref.dtype)

        # Per-tile BN statistics (Chan-combined in the wrapper).  Padded rows
        # of A are zero, so padded rows of h are exactly zero -> they add
        # nothing to the sum, but must be masked out of the centered sumsq.
        rows = i * tm + lax.broadcasted_iota(jnp.int32, (tm, 1), 0)
        mask = (rows < n_real).astype(jnp.float32)
        cnt = jnp.maximum(jnp.sum(mask), 1.0)
        s = jnp.sum(h, axis=0, keepdims=True)            # (1, Cout)
        tmean = s * (1.0 / cnt)
        d = (h - tmean) * mask
        css = jnp.sum(d * d, axis=0, keepdims=True)      # (1, Cout)
        stats_ref[0, 0:1, :] = s
        stats_ref[0, 1:2, :] = css


def bn_relu_kernel(h_ref, mean_ref, inv_ref, o_ref):
    """Elementwise relu((h - mean) * inv_std); bf16 in, bf16 out, f32 math."""
    h = h_ref[...].astype(jnp.float32)
    o_ref[...] = jnp.maximum((h - mean_ref[...]) * inv_ref[...],
                             0.0).astype(o_ref.dtype)


def linear_nobias_kernel(x_ref, wt_ref, o_ref):
    """Y = X @ Wt (Wt pre-transposed [in, out]); bias dropped (BN cancels it)."""
    o_ref[...] = jnp.dot(x_ref[...], wt_ref[...],
                         preferred_element_type=jnp.float32).astype(o_ref.dtype)


def linear_bias_kernel(x_ref, wt_ref, b_ref, o_ref):
    """Final classifier: o = x @ Wt + b."""
    acc = jnp.dot(x_ref[...], wt_ref[...], preferred_element_type=jnp.float32)
    o_ref[...] = (acc + b_ref[...]).astype(o_ref.dtype)


# ----------------------------------------------------------------------------
# Wrappers (pallas_call plumbing)
# ----------------------------------------------------------------------------
def linear_layer(x_bf16, wt_bf16, *, bias=None, out_dtype, budget):
    """Row-tiled X @ Wt (+ bias), Wt resident in VMEM."""
    n_pad, cin = x_bf16.shape
    cout = wt_bf16.shape[1]
    rows = _pick_row_tile(n_pad)
    n_i = n_pad // rows

    if bias is None:
        kernel = linear_nobias_kernel
        in_specs = [pl.BlockSpec((rows, cin), lambda i: (i, 0)),
                    pl.BlockSpec((cin, cout), lambda i: (0, 0))]
        args = (x_bf16, wt_bf16)
    else:
        kernel = linear_bias_kernel
        in_specs = [pl.BlockSpec((rows, cin), lambda i: (i, 0)),
                    pl.BlockSpec((cin, cout), lambda i: (0, 0)),
                    pl.BlockSpec((1, cout), lambda i: (0, 0))]
        args = (x_bf16, wt_bf16, bias)

    return pl.pallas_call(
        kernel,
        out_shape=jax.ShapeDtypeStruct((n_pad, cout), out_dtype),
        grid_spec=pltpu.PrefetchScalarGridSpec(
            num_scalar_prefetch=0,
            grid=(n_i,),
            in_specs=in_specs,
            out_specs=pl.BlockSpec((rows, cout), lambda i: (i, 0)),
        ),
        compiler_params=pltpu.CompilerParams(
            dimension_semantics=("parallel",),
            vmem_limit_bytes=budget,
        ),
        cost_estimate=pl.CostEstimate(
            flops=2 * n_pad * cin * cout, transcendentals=0,
            bytes_accessed=n_pad * cin * 2 + cin * cout * 2 + n_pad * cout * 2),
    )(*args)


def spmm_bn_stats(a_bf16, y_bf16, *, n_real, tm, budget):
    """H = A @ Y (bf16 out) plus batch-norm mean / inv_std over real rows."""
    n_pad = a_bf16.shape[0]
    cout = y_bf16.shape[1]
    n_i = n_pad // tm
    tk = _pick_tk(n_pad, tm, cout, budget)
    n_k = n_pad // tk

    kernel = functools.partial(spmm_stats_kernel, n_real=n_real, tm=tm, tk=tk)

    flops = 2 * n_pad * n_pad * cout
    bytes_acc = (n_pad * n_pad * 2          # A read once
                 + n_pad * cout * 2         # Y read once (resident)
                 + n_pad * cout * 2         # H written (bf16)
                 + n_i * 2 * cout * 4)      # stats

    h, stats = pl.pallas_call(
        kernel,
        out_shape=(
            jax.ShapeDtypeStruct((n_pad, cout), jnp.bfloat16),
            jax.ShapeDtypeStruct((n_i, 2, cout), jnp.float32),
        ),
        grid_spec=pltpu.PrefetchScalarGridSpec(
            num_scalar_prefetch=0,
            grid=(n_i, n_k),
            in_specs=[
                pl.BlockSpec((tm, tk), lambda i, k: (i, k)),        # A tile
                pl.BlockSpec((n_pad, cout), lambda i, k: (0, 0)),   # Y resident
            ],
            out_specs=[
                pl.BlockSpec((tm, cout), lambda i, k: (i, 0)),
                pl.BlockSpec((1, 2, cout), lambda i, k: (i, 0, 0)),
            ],
            scratch_shapes=[pltpu.VMEM((tm, cout), jnp.float32)],
        ),
        compiler_params=pltpu.CompilerParams(
            dimension_semantics=("parallel", "arbitrary"),
            vmem_limit_bytes=budget,
        ),
        cost_estimate=pl.CostEstimate(
            flops=flops, transcendentals=0, bytes_accessed=bytes_acc),
    )(a_bf16, y_bf16)

    # Chan / Welford combination of per-tile stats (tiny [n_i, C] XLA glue).
    cnt = jnp.asarray([float(min(tm, n_real - i * tm)) for i in range(n_i)],
                      jnp.float32)
    s = stats[:, 0, :]                                   # (n_i, C)
    css = stats[:, 1, :]                                 # (n_i, C)
    mean = jnp.sum(s, axis=0) / float(n_real)
    tmean = s / cnt[:, None]
    m2 = jnp.sum(css, axis=0) + jnp.sum(
        cnt[:, None] * jnp.square(tmean - mean[None, :]), axis=0)
    var = jnp.maximum(m2 / float(n_real), 0.0)           # biased, as PyTorch BN
    inv_std = lax.rsqrt(var + BN_EPS)
    return h, mean.reshape(1, cout), inv_std.reshape(1, cout)


def bn_relu(h_bf16, mean2, inv2, *, budget):
    """Tiled normalize + ReLU with large row blocks (mem-bound pass)."""
    n_pad, cout = h_bf16.shape
    rows = _pick_row_tile(n_pad)
    n_i = n_pad // rows
    return pl.pallas_call(
        bn_relu_kernel,
        out_shape=jax.ShapeDtypeStruct((n_pad, cout), jnp.bfloat16),
        grid_spec=pltpu.PrefetchScalarGridSpec(
            num_scalar_prefetch=0,
            grid=(n_i,),
            in_specs=[
                pl.BlockSpec((rows, cout), lambda i: (i, 0)),
                pl.BlockSpec((1, cout), lambda i: (0, 0)),
                pl.BlockSpec((1, cout), lambda i: (0, 0)),
            ],
            out_specs=pl.BlockSpec((rows, cout), lambda i: (i, 0)),
        ),
        compiler_params=pltpu.CompilerParams(
            dimension_semantics=("parallel",),
            vmem_limit_bytes=budget,
        ),
    )(h_bf16, mean2, inv2)


# ----------------------------------------------------------------------------
# Model: parameter init + forward
# ----------------------------------------------------------------------------
def init_gnn_params(key, hidden_channels, num_features, num_layers, num_classes):
    """PyTorch-Linear-style init: U(-1/sqrt(fan_in), 1/sqrt(fan_in))."""
    params = {"linears": [], "last": None}
    dims = [(num_features, hidden_channels)] + [
        (hidden_channels, hidden_channels) for _ in range(num_layers - 1)
    ]
    for fan_in, fan_out in dims:
        key, kw, kb = jax.random.split(key, 3)
        bound = 1.0 / jnp.sqrt(fan_in)
        w = jax.random.uniform(kw, (fan_out, fan_in), jnp.float32, -bound, bound)
        b = jax.random.uniform(kb, (fan_out,), jnp.float32, -bound, bound)
        params["linears"].append((w, b))
    key, kw, kb = jax.random.split(key, 3)
    bound = 1.0 / jnp.sqrt(hidden_channels)
    w = jax.random.uniform(kw, (num_classes, hidden_channels), jnp.float32,
                           -bound, bound)
    b = jax.random.uniform(kb, (num_classes,), jnp.float32, -bound, bound)
    params["last"] = (w, b)
    return params


def _pad_linear(w, b):
    """PyTorch [out, in] weight -> padded, pre-transposed bf16 [in_p, out_p]."""
    cout, cin = w.shape
    cin_p = _round_up(cin, 128)
    cout_p = _round_up(cout, 128)
    wt = jnp.pad(w.T, ((0, cin_p - cin), (0, cout_p - cout))).astype(jnp.bfloat16)
    bp = jnp.pad(b, (0, cout_p - cout)).reshape(1, cout_p).astype(jnp.float32)
    return wt, bp


def gnn_forward(params, x, edge_index):
    """x: [N, num_features] float32, edge_index: [2, E] int32."""
    n, f = x.shape
    budget = _vmem_budget()

    # Row-tile selection: 512-row tiles for large graphs (also gives >= 2 row
    # tiles so the 'parallel' axis splits across v7x's two TensorCores),
    # collapse to one lane-aligned tile for tiny graphs.
    if n <= 512:
        n_pad = _round_up(n, 128)
        tm = n_pad
    else:
        tm = 512
        n_pad = _round_up(n, tm)

    # Dense adjacency (duplicate edges accumulate, as torch.sparse) with
    # self-loops appended to the index list; a single scatter-add into the
    # padded buffer, then one cast.  Small integer counts -> exact in bf16.
    diag = jnp.arange(n, dtype=edge_index.dtype)
    src = jnp.concatenate([edge_index[0], diag])
    dst = jnp.concatenate([edge_index[1], diag])
    a = jnp.zeros((n_pad, n_pad), jnp.float32)
    a = a.at[src, dst].add(1.0).astype(jnp.bfloat16)

    # Lane-pad node features to 128 channels; stream activations in bf16.
    f_pad = _round_up(f, 128)
    h = jnp.pad(x, ((0, n_pad - n), (0, f_pad - f))).astype(jnp.bfloat16)

    for (w, b) in params["linears"]:
        # Bias is dropped: no-affine BatchNorm subtracts the batch mean, so a
        # per-channel constant shift cancels exactly.
        wt, _ = _pad_linear(w, b)
        y = linear_layer(h, wt, out_dtype=jnp.bfloat16, budget=budget)
        h_pre, mean2, inv2 = spmm_bn_stats(a, y, n_real=n, tm=tm, budget=budget)
        # Padded rows become nonzero after BN+ReLU, but A's padded columns are
        # zero and the final logits are sliced, so they never reach real rows.
        h = bn_relu(h_pre, mean2, inv2, budget=budget)

    w, b = params["last"]
    num_classes = w.shape[0]
    wt, bp = _pad_linear(w, b)
    logits_pad = linear_layer(h, wt, bias=bp, out_dtype=jnp.float32,
                              budget=budget)
    return logits_pad[:n, :num_classes]


# ----------------------------------------------------------------------------
# Demo
# ----------------------------------------------------------------------------
if __name__ == "__main__":
    num_nodes = 16
    num_features = 8
    hidden_channels = 32
    num_layers = 2
    num_classes = 4
    num_edges = 40

    key = jax.random.PRNGKey(0)
    k_x, k_src, k_dst, k_params = jax.random.split(key, 4)

    x = jax.random.normal(k_x, (num_nodes, num_features), jnp.float32)
    src = jax.random.randint(k_src, (num_edges,), 0, num_nodes, jnp.int32)
    dst = jax.random.randint(k_dst, (num_edges,), 0, num_nodes, jnp.int32)
    edge_index = jnp.stack([src, dst], axis=0)

    params = init_gnn_params(
        k_params, hidden_channels, num_features, num_layers, num_classes
    )

    fwd = jax.jit(gnn_forward)
    out = jax.block_until_ready(fwd(params, x, edge_index))
    assert out.shape == (num_nodes, num_classes), out.shape
    assert bool(jnp.all(jnp.isfinite(out)))
    print("KERNEL_OK")
</pallas_src>

<mosaic_0001>
module attributes {stable_mosaic.version = 11 : i64} {
  func.func private @main(%arg0: i32) attributes {dimension_semantics = [#tpu.dimension_semantics<core_parallel>], iteration_bounds = array<i64: 2>, tpu.core_type = #tpu.core_type<sc_scalar_subcore>, window_params = []} {
    return
  }
}

module attributes {stable_mosaic.version = 11 : i64} {
  func.func private @main(%arg0: i32) attributes {dimension_semantics = [#tpu.dimension_semantics<core_parallel>], iteration_bounds = array<i64: 2>, tpu.core_type = #tpu.core_type<sc_scalar_subcore>, window_params = []} {
    return
  }
}

module attributes {stable_mosaic.version = 11 : i64} {
  func.func @linear_nobias_kernel(%arg0: i32, %arg1: memref<128x128xbf16, #tpu.memory_space<vmem>>, %arg2: memref<128x128xbf16, #tpu.memory_space<vmem>>, %arg3: memref<128x128xbf16, #tpu.memory_space<vmem>>) attributes {dimension_semantics = [#tpu.dimension_semantics<parallel>], iteration_bounds = array<i64: 1>, scalar_prefetch = 0 : i64, scratch_operands = 0 : i64, tpu.core_type = #tpu.core_type<tc>, window_params = [{transform_indices = @transform_0, window_bounds = array<i64: 128, 128>}, {pipeline_mode = #tpu.pipeline_mode<synchronous>, transform_indices = @transform_1, window_bounds = array<i64: 128, 128>}, {transform_indices = @transform_2, window_bounds = array<i64: 128, 128>}]} {
    %c0 = arith.constant 0 : index
    %c0_0 = arith.constant 0 : index
    %0 = vector.load %arg1[%c0, %c0_0] : memref<128x128xbf16, #tpu.memory_space<vmem>>, vector<128x128xbf16>
    %c0_1 = arith.constant 0 : index
    %c0_2 = arith.constant 0 : index
    %1 = vector.load %arg2[%c0_1, %c0_2] : memref<128x128xbf16, #tpu.memory_space<vmem>>, vector<128x128xbf16>
    %cst = arith.constant dense<0.000000e+00> : vector<128x128xf32>
    %2 = tpu.matmul %0, %1, %cst {dimension_numbers = #tpu.dot_dimension_numbers<[1], [0], [0], [1], [0, 0, 1, 1], [], []>} : vector<128x128xbf16>, vector<128x128xbf16>, vector<128x128xf32> -> vector<128x128xf32>
    %3 = arith.truncf %2 : vector<128x128xf32> to vector<128x128xbf16>
    %c0_3 = arith.constant 0 : index
    %c0_4 = arith.constant 0 : index
    %4 = vector.load %arg3[%c0_3, %c0_4] : memref<128x128xbf16, #tpu.memory_space<vmem>>, vector<128x128xbf16>
    tpu.vector_store %arg3[%c0_3, %c0_4], %3 {strides = array<i32>} : memref<128x128xbf16, #tpu.memory_space<vmem>>, vector<128x128xbf16>,
    return
  }
  func.func @transform_0(%arg0: i32) -> (i32, i32) {
    %c0_i32 = arith.constant 0 : i32
    %c0_i32_0 = arith.constant 0 : i32
    return %arg0, %c0_i32 : i32, i32
  }
  func.func @transform_1(%arg0: i32) -> (i32, i32) {
    %c0_i32 = arith.constant 0 : i32
    %c0_i32_0 = arith.constant 0 : i32
    %c0_i32_1 = arith.constant 0 : i32
    return %c0_i32, %c0_i32_0 : i32, i32
  }
  func.func @transform_2(%arg0: i32) -> (i32, i32) {
    %c0_i32 = arith.constant 0 : i32
    %c0_i32_0 = arith.constant 0 : i32
    return %arg0, %c0_i32 : i32, i32
  }
}

module attributes {stable_mosaic.version = 11 : i64} {
  func.func @spmm_stats_kernel(%arg0: i32, %arg1: i32, %arg2: memref<128x128xbf16, #tpu.memory_space<vmem>>, %arg3: memref<128x128xbf16, #tpu.memory_space<vmem>>, %arg4: memref<128x128xbf16, #tpu.memory_space<vmem>>, %arg5: memref<1x2x128xf32, #tpu.memory_space<vmem>>, %arg6: memref<128x128xf32, #tpu.memory_space<vmem>>) attributes {dimension_semantics = [#tpu.dimension_semantics<parallel>, #tpu.dimension_semantics<arbitrary>], iteration_bounds = array<i64: 1, 1>, scalar_prefetch = 0 : i64, scratch_operands = 1 : i64, tpu.core_type = #tpu.core_type<tc>, window_params = [{transform_indices = @transform_0, window_bounds = array<i64: 128, 128>}, {pipeline_mode = #tpu.pipeline_mode<synchronous>, transform_indices = @transform_1, window_bounds = array<i64: 128, 128>}, {transform_indices = @transform_2, window_bounds = array<i64: 128, 128>}, {transform_indices = @transform_3, window_bounds = array<i64: 1, 2, 128>}]} {
    %c0_i32 = arith.constant 0 : i32
    %0 = arith.cmpi eq, %arg1, %c0_i32 : i32
    %1 = arith.extui %0 : i1 to i32
    %c0_i32_0 = arith.constant 0 : i32
    %2 = arith.cmpi ne, %1, %c0_i32_0 : i32
    scf.if %2 {
      %cst_9 = arith.constant 0.000000e+00 : f32
      %15 = vector.broadcast %cst_9 : f32 to vector<128x128xf32>
      %c0_10 = arith.constant 0 : index
      %c0_11 = arith.constant 0 : index
      %16 = vector.load %arg6[%c0_10, %c0_11] : memref<128x128xf32, #tpu.memory_space<vmem>>, vector<128x128xf32>
      tpu.vector_store %arg6[%c0_10, %c0_11], %15 {strides = array<i32>} : memref<128x128xf32, #tpu.memory_space<vmem>>, vector<128x128xf32>,
    } else {
    }
    %c128_i32 = arith.constant 128 : i32
    %3 = arith.muli %arg1, %c128_i32 : i32
    %4 = tpu.assume_multiple %3, 128 : i32
    %5 = arith.index_cast %4 : i32 to index
    %c0 = arith.constant 0 : index
    %6 = vector.load %arg3[%5, %c0] : memref<128x128xbf16, #tpu.memory_space<vmem>>, vector<128x128xbf16>
    %c0_1 = arith.constant 0 : index
    %c0_2 = arith.constant 0 : index
    %7 = vector.load %arg6[%c0_1, %c0_2] : memref<128x128xf32, #tpu.memory_space<vmem>>, vector<128x128xf32>
    %c0_3 = arith.constant 0 : index
    %c0_4 = arith.constant 0 : index
    %8 = vector.load %arg2[%c0_3, %c0_4] : memref<128x128xbf16, #tpu.memory_space<vmem>>, vector<128x128xbf16>
    %cst = arith.constant dense<0.000000e+00> : vector<128x128xf32>
    %9 = tpu.matmul %8, %6, %cst {dimension_numbers = #tpu.dot_dimension_numbers<[1], [0], [0], [1], [0, 0, 1, 1], [], []>} : vector<128x128xbf16>, vector<128x128xbf16>, vector<128x128xf32> -> vector<128x128xf32>
    %10 = arith.addf %7, %9 : vector<128x128xf32>
    %c0_5 = arith.constant 0 : index
    %c0_6 = arith.constant 0 : index
    %11 = vector.load %arg6[%c0_5, %c0_6] : memref<128x128xf32, #tpu.memory_space<vmem>>, vector<128x128xf32>
    tpu.vector_store %arg6[%c0_5, %c0_6], %10 {strides = array<i32>} : memref<128x128xf32, #tpu.memory_space<vmem>>, vector<128x128xf32>,
    %c0_i32_7 = arith.constant 0 : i32
    %12 = arith.cmpi eq, %arg1, %c0_i32_7 : i32
    %13 = arith.extui %12 : i1 to i32
    %c0_i32_8 = arith.constant 0 : i32
    %14 = arith.cmpi ne, %13, %c0_i32_8 : i32
    scf.if %14 {
      %c0_9 = arith.constant 0 : index
      %c0_10 = arith.constant 0 : index
      %15 = vector.load %arg6[%c0_9, %c0_10] : memref<128x128xf32, #tpu.memory_space<vmem>>, vector<128x128xf32>
      %16 = arith.truncf %15 : vector<128x128xf32> to vector<128x128xbf16>
      %c0_11 = arith.constant 0 : index
      %c0_12 = arith.constant 0 : index
      %17 = vector.load %arg4[%c0_11, %c0_12] : memref<128x128xbf16, #tpu.memory_space<vmem>>, vector<128x128xbf16>
      tpu.vector_store %arg4[%c0_11, %c0_12], %16 {strides = array<i32>} : memref<128x128xbf16, #tpu.memory_space<vmem>>, vector<128x128xbf16>,
      %c128_i32_13 = arith.constant 128 : i32
      %18 = arith.muli %arg0, %c128_i32_13 : i32
      %19 = tpu.iota {dimensions = array<i32: 0>} : vector<128x1xi32>
      %20 = vector.broadcast %18 : i32 to vector<128x1xi32>
      %21 = arith.addi %20, %19 : vector<128x1xi32>
      %c16_i32 = arith.constant 16 : i32
      %22 = vector.broadcast %c16_i32 : i32 to vector<128x1xi32>
      %23 = arith.cmpi slt, %21, %22 : vector<128x1xi32>
      %24 = arith.extui %23 : vector<128x1xi1> to vector<128x1xi32>
      %25 = arith.sitofp %24 : vector<128x1xi32> to vector<128x1xf32>
      %26 = vector.shape_cast %25 : vector<128x1xf32> to vector<1x128x1xf32>
      %cst_14 = arith.constant dense<0.000000e+00> : vector<1xf32>
      %27 = vector.multi_reduction <add>, %26, %cst_14 [1, 2] : vector<1x128x1xf32> to vector<1xf32>
      %28 = vector.shape_cast %27 : vector<1xf32> to vector<1x1x1xf32>
      %29 = vector.extract %28[0, 0, 0] : f32 from vector<1x1x1xf32>
      %cst_15 = arith.constant 1.000000e+00 : f32
      %30 = arith.maximumf %29, %cst_15 : f32
      %cst_16 = arith.constant dense<0.000000e+00> : vector<128xf32>
      %31 = vector.multi_reduction <add>, %15, %cst_16 [0] : vector<128x128xf32> to vector<128xf32>
      %32 = vector.shape_cast %31 : vector<128xf32> to vector<1x128xf32>
      %cst_17 = arith.constant 1.000000e+00 : f32
      %33 = arith.divf %cst_17, %30 : f32
      %34 = vector.broadcast %33 : f32 to vector<1x128xf32>
      %35 = arith.mulf %32, %34 : vector<1x128xf32>
      %36 = vector.broadcast %35 : vector<1x128xf32> to vector<128x128xf32>
      %37 = arith.subf %15, %36 : vector<128x128xf32>
      %38 = vector.broadcast %25 : vector<128x1xf32> to vector<128x128xf32>
      %39 = arith.mulf %37, %38 : vector<128x128xf32>
      %40 = arith.mulf %39, %39 : vector<128x128xf32>
      %cst_18 = arith.constant dense<0.000000e+00> : vector<128xf32>
      %41 = vector.multi_reduction <add>, %40, %cst_18 [0] : vector<128x128xf32> to vector<128xf32>
      %42 = vector.shape_cast %41 : vector<128xf32> to vector<1x128xf32>
      %c0_19 = arith.constant 0 : index
      %c0_20 = arith.constant 0 : index
      %c0_21 = arith.constant 0 : index
      %43 = vector.load %arg5[%c0_19, %c0_20, %c0_21] : memref<1x2x128xf32, #tpu.memory_space<vmem>>, vector<1x1x128xf32>
      %44 = vector.shape_cast %43 : vector<1x1x128xf32> to vector<1x128xf32>
      %45 = vector.shape_cast %32 : vector<1x128xf32> to vector<1x1x128xf32>
      tpu.vector_store %arg5[%c0_19, %c0_20, %c0_21], %45 {strides = array<i32>} : memref<1x2x128xf32, #tpu.memory_space<vmem>>, vector<1x1x128xf32>,
      %c0_22 = arith.constant 0 : index
      %c1 = arith.constant 1 : index
      %c0_23 = arith.constant 0 : index
      %46 = vector.load %arg5[%c0_22, %c1, %c0_23] : memref<1x2x128xf32, #tpu.memory_space<vmem>>, vector<1x1x128xf32>
      %47 = vector.shape_cast %46 : vector<1x1x128xf32> to vector<1x128xf32>
      %48 = vector.shape_cast %42 : vector<1x128xf32> to vector<1x1x128xf32>
      tpu.vector_store %arg5[%c0_22, %c1, %c0_23], %48 {strides = array<i32>} : memref<1x2x128xf32, #tpu.memory_space<vmem>>, vector<1x1x128xf32>,
    } else {
    }
    return
  }
  func.func @transform_0(%arg0: i32, %arg1: i32) -> (i32, i32) {
    %c0_i32 = arith.constant 0 : i32
    return %arg0, %arg1 : i32, i32
  }
  func.func @transform_1(%arg0: i32, %arg1: i32) -> (i32, i32) {
    %c0_i32 = arith.constant 0 : i32
    %c0_i32_0 = arith.constant 0 : i32
    %c0_i32_1 = arith.constant 0 : i32
    return %c0_i32, %c0_i32_0 : i32, i32
  }
  func.func @transform_2(%arg0: i32, %arg1: i32) -> (i32, i32) {
    %c0_i32 = arith.constant 0 : i32
    %c0_i32_0 = arith.constant 0 : i32
    return %arg0, %c0_i32 : i32, i32
  }
  func.func @transform_3(%arg0: i32, %arg1: i32) -> (i32, i32, i32) {
    %c0_i32 = arith.constant 0 : i32
    %c0_i32_0 = arith.constant 0 : i32
    %c0_i32_1 = arith.constant 0 : i32
    return %arg0, %c0_i32, %c0_i32_0 : i32, i32, i32
  }
}

module attributes {stable_mosaic.version = 11 : i64} {
  func.func @bn_relu_kernel(%arg0: i32, %arg1: memref<128x128xbf16, #tpu.memory_space<vmem>>, %arg2: memref<1x128xf32, #tpu.memory_space<vmem>>, %arg3: memref<1x128xf32, #tpu.memory_space<vmem>>, %arg4: memref<128x128xbf16, #tpu.memory_space<vmem>>) attributes {dimension_semantics = [#tpu.dimension_semantics<parallel>], iteration_bounds = array<i64: 1>, scalar_prefetch = 0 : i64, scratch_operands = 0 : i64, tpu.core_type = #tpu.core_type<tc>, window_params = [{transform_indices = @transform_0, window_bounds = array<i64: 128, 128>}, {pipeline_mode = #tpu.pipeline_mode<synchronous>, transform_indices = @transform_1, window_bounds = array<i64: 1, 128>}, {pipeline_mode = #tpu.pipeline_mode<synchronous>, transform_indices = @transform_2, window_bounds = array<i64: 1, 128>}, {transform_indices = @transform_3, window_bounds = array<i64: 128, 128>}]} {
    %c0 = arith.constant 0 : index
    %c0_0 = arith.constant 0 : index
    %0 = vector.load %arg1[%c0, %c0_0] : memref<128x128xbf16, #tpu.memory_space<vmem>>, vector<128x128xbf16>
    %1 = arith.extf %0 : vector<128x128xbf16> to vector<128x128xf32>
    %c0_1 = arith.constant 0 : index
    %c0_2 = arith.constant 0 : index
    %2 = vector.load %arg2[%c0_1, %c0_2] : memref<1x128xf32, #tpu.memory_space<vmem>>, vector<1x128xf32>
    %3 = vector.broadcast %2 : vector<1x128xf32> to vector<128x128xf32>
    %4 = arith.subf %1, %3 : vector<128x128xf32>
    %c0_3 = arith.constant 0 : index
    %c0_4 = arith.constant 0 : index
    %5 = vector.load %arg3[%c0_3, %c0_4] : memref<1x128xf32, #tpu.memory_space<vmem>>, vector<1x128xf32>
    %6 = vector.broadcast %5 : vector<1x128xf32> to vector<128x128xf32>
    %7 = arith.mulf %4, %6 : vector<128x128xf32>
    %cst = arith.constant 0.000000e+00 : f32
    %8 = vector.broadcast %cst : f32 to vector<128x128xf32>
    %9 = arith.maximumf %7, %8 : vector<128x128xf32>
    %10 = arith.truncf %9 : vector<128x128xf32> to vector<128x128xbf16>
    %c0_5 = arith.constant 0 : index
    %c0_6 = arith.constant 0 : index
    %11 = vector.load %arg4[%c0_5, %c0_6] : memref<128x128xbf16, #tpu.memory_space<vmem>>, vector<128x128xbf16>
    tpu.vector_store %arg4[%c0_5, %c0_6], %10 {strides = array<i32>} : memref<128x128xbf16, #tpu.memory_space<vmem>>, vector<128x128xbf16>,
    return
  }
  func.func @transform_0(%arg0: i32) -> (i32, i32) {
    %c0_i32 = arith.constant 0 : i32
    %c0_i32_0 = arith.constant 0 : i32
    return %arg0, %c0_i32 : i32, i32
  }
  func.func @transform_1(%arg0: i32) -> (i32, i32) {
    %c0_i32 = arith.constant 0 : i32
    %c0_i32_0 = arith.constant 0 : i32
    %c0_i32_1 = arith.constant 0 : i32
    return %c0_i32, %c0_i32_0 : i32, i32
  }
  func.func @transform_2(%arg0: i32) -> (i32, i32) {
    %c0_i32 = arith.constant 0 : i32
    %c0_i32_0 = arith.constant 0 : i32
    %c0_i32_1 = arith.constant 0 : i32
    return %c0_i32, %c0_i32_0 : i32, i32
  }
  func.func @transform_3(%arg0: i32) -> (i32, i32) {
    %c0_i32 = arith.constant 0 : i32
    %c0_i32_0 = arith.constant 0 : i32
    return %arg0, %c0_i32 : i32, i32
  }
}

module attributes {stable_mosaic.version = 11 : i64} {
  func.func @linear_bias_kernel(%arg0: i32, %arg1: memref<128x128xbf16, #tpu.memory_space<vmem>>, %arg2: memref<128x128xbf16, #tpu.memory_space<vmem>>, %arg3: memref<1x128xf32, #tpu.memory_space<vmem>>, %arg4: memref<128x128xf32, #tpu.memory_space<vmem>>) attributes {dimension_semantics = [#tpu.dimension_semantics<parallel>], iteration_bounds = array<i64: 1>, scalar_prefetch = 0 : i64, scratch_operands = 0 : i64, tpu.core_type = #tpu.core_type<tc>, window_params = [{transform_indices = @transform_0, window_bounds = array<i64: 128, 128>}, {pipeline_mode = #tpu.pipeline_mode<synchronous>, transform_indices = @transform_1, window_bounds = array<i64: 128, 128>}, {pipeline_mode = #tpu.pipeline_mode<synchronous>, transform_indices = @transform_2, window_bounds = array<i64: 1, 128>}, {transform_indices = @transform_3, window_bounds = array<i64: 128, 128>}]} {
    %c0 = arith.constant 0 : index
    %c0_0 = arith.constant 0 : index
    %0 = vector.load %arg1[%c0, %c0_0] : memref<128x128xbf16, #tpu.memory_space<vmem>>, vector<128x128xbf16>
    %c0_1 = arith.constant 0 : index
    %c0_2 = arith.constant 0 : index
    %1 = vector.load %arg2[%c0_1, %c0_2] : memref<128x128xbf16, #tpu.memory_space<vmem>>, vector<128x128xbf16>
    %cst = arith.constant dense<0.000000e+00> : vector<128x128xf32>
    %2 = tpu.matmul %0, %1, %cst {dimension_numbers = #tpu.dot_dimension_numbers<[1], [0], [0], [1], [0, 0, 1, 1], [], []>} : vector<128x128xbf16>, vector<128x128xbf16>, vector<128x128xf32> -> vector<128x128xf32>
    %c0_3 = arith.constant 0 : index
    %c0_4 = arith.constant 0 : index
    %3 = vector.load %arg3[%c0_3, %c0_4] : memref<1x128xf32, #tpu.memory_space<vmem>>, vector<1x128xf32>
    %4 = vector.broadcast %3 : vector<1x128xf32> to vector<128x128xf32>
    %5 = arith.addf %2, %4 : vector<128x128xf32>
    %c0_5 = arith.constant 0 : index
    %c0_6 = arith.constant 0 : index
    %6 = vector.load %arg4[%c0_5, %c0_6] : memref<128x128xf32, #tpu.memory_space<vmem>>, vector<128x128xf32>
    tpu.vector_store %arg4[%c0_5, %c0_6], %5 {strides = array<i32>} : memref<128x128xf32, #tpu.memory_space<vmem>>, vector<128x128xf32>,
    return
  }
  func.func @transform_0(%arg0: i32) -> (i32, i32) {
    %c0_i32 = arith.constant 0 : i32
    %c0_i32_0 = arith.constant 0 : i32
    return %arg0, %c0_i32 : i32, i32
  }
  func.func @transform_1(%arg0: i32) -> (i32, i32) {
    %c0_i32 = arith.constant 0 : i32
    %c0_i32_0 = arith.constant 0 : i32
    %c0_i32_1 = arith.constant 0 : i32
    return %c0_i32, %c0_i32_0 : i32, i32
  }
  func.func @transform_2(%arg0: i32) -> (i32, i32) {
    %c0_i32 = arith.constant 0 : i32
    %c0_i32_0 = arith.constant 0 : i32
    %c0_i32_1 = arith.constant 0 : i32
    return %c0_i32, %c0_i32_0 : i32, i32
  }
  func.func @transform_3(%arg0: i32) -> (i32, i32) {
    %c0_i32 = arith.constant 0 : i32
    %c0_i32_0 = arith.constant 0 : i32
    return %arg0, %c0_i32 : i32, i32
  }
}

</mosaic_0001>

<bundles_post_ra>
// kernel: gnn_forward.7
= control target key start
LH: loop header
LB: loop body
LE: loop exit
PB: predicated region body
PF: predicated region fallthrough
CT: control target
= control target key end

     0   :  { %s583_s1 = inlined_call_operand.vmem [shape: bf16[128,128], index: 1, kind: input, shape index: {}]   ;;  %s584_s0 = inlined_call_operand.vmem [shape: bf16[128,128], index: 0, kind: input, shape index: {}]   ;;  %s585_s2 = inlined_call_operand.vmem [shape: bf16[128,128], index: 2, kind: output, shape index: {}]  }
   0x1   :  { %v480_v0 = vld [vmem:[%s583_s1 + $0x38] sm:$0xff]   ;;  %v481_v1 = vld [vmem:[%s583_s1 + $0x30] sm:$0xff]   ;;  %v482_v2 = vld [vmem:[%s583_s1 + $0x28] sm:$0xff]  }
   0x2   :  { %432 = vmatprep.subr.bf16.mxu0 %v480_v0  ;;  %464 = vmatprep.subr.bf16.mxu1 %v480_v0  ;;  %v483_v3 = vld [vmem:[%s583_s1 + $0x20] sm:$0xff]   ;;  %v484_v6 = vld [vmem:[%s583_s1 + $0x18] sm:$0xff]   ;;  %v485_v7 = vld [vmem:[%s583_s1 + $0x10] sm:$0xff]  }
   0x3   :  { %433 = vmatpush3.bf16.msra.mxu0 %v480_v0  ;;  %472 = vmatpush3.bf16.msra.mxu1 %v480_v0  ;;  %v488_v4 = vld [vmem:[%s584_s0] sm:$0xff]   ;;  %v486_v8 = vld [vmem:[%s583_s1 + $0x8] sm:$0xff]   ;;  %v492_v12 = vld [vmem:[%s584_s0 + $0x10] sm:$0xff]  }
   0x4   :  { %434 = vmatprep.subr.bf16.mxu0 %v481_v1  ;;  %465 = vmatprep.subr.bf16.mxu1 %v481_v1  ;;  %v489_v5 = vld [vmem:[%s584_s0 + $0x20] sm:$0xff]   ;;  %v490_v10 = vld [vmem:[%s584_s0 + $0x8] sm:$0xff]   ;;  %v493_v13 = vld [vmem:[%s584_s0 + $0x30] sm:$0xff]  }
   0x5   :  { %448 = vmatprep.mubr.bf16.mxu0 %v488_v4  ;;  %456 = vmatprep.mubr.bf16.mxu1 %v489_v5  ;;  %v487_v9 = vld [vmem:[%s583_s1] sm:$0xff]   ;;  %v491_v11 = vld [vmem:[%s584_s0 + $0x28] sm:$0xff]   ;;  %v494_v14 = vld [vmem:[%s584_s0 + $0x18] sm:$0xff]  }
   0x6   :  { %v495_v15 = vld [vmem:[%s584_s0 + $0x38] sm:$0xff]  }
   0x7   :  { %435 = vmatpush3.bf16.msra.mxu0 %v481_v1  ;;  %473 = vmatpush3.bf16.msra.mxu1 %v481_v1 }
   0x8   :  { %436 = vmatprep.subr.bf16.mxu0 %v482_v2  ;;  %466 = vmatprep.subr.bf16.mxu1 %v482_v2 }
   0xb   :  { %437 = vmatpush3.bf16.msra.mxu0 %v482_v2  ;;  %474 = vmatpush3.bf16.msra.mxu1 %v482_v2 }
   0xc   :  { %438 = vmatprep.subr.bf16.mxu0 %v483_v3  ;;  %467 = vmatprep.subr.bf16.mxu1 %v483_v3 }
   0xf   :  { %439 = vmatpush3.bf16.msra.mxu0 %v483_v3  ;;  %475 = vmatpush3.bf16.msra.mxu1 %v483_v3 }
  0x10   :  { %440 = vmatprep.subr.bf16.mxu0 %v484_v6  ;;  %468 = vmatprep.subr.bf16.mxu1 %v484_v6 }
  0x13   :  { %441 = vmatpush3.bf16.msra.mxu0 %v484_v6  ;;  %476 = vmatpush3.bf16.msra.mxu1 %v484_v6 }
  0x14   :  { %442 = vmatprep.subr.bf16.mxu0 %v485_v7  ;;  %469 = vmatprep.subr.bf16.mxu1 %v485_v7 }
  0x17   :  { %443 = vmatpush3.bf16.msra.mxu0 %v485_v7  ;;  %477 = vmatpush3.bf16.msra.mxu1 %v485_v7 }
  0x18   :  { %444 = vmatprep.subr.bf16.mxu0 %v486_v8  ;;  %470 = vmatprep.subr.bf16.mxu1 %v486_v8 }
  0x1b   :  { %445 = vmatpush3.bf16.msra.mxu0 %v486_v8  ;;  %478 = vmatpush3.bf16.msra.mxu1 %v486_v8 }
  0x1c   :  { %446 = vmatprep.subr.bf16.mxu0 %v487_v9  ;;  %471 = vmatprep.subr.bf16.mxu1 %v487_v9 }
  0x1f   :  { %447 = vmatpush3.bf16.msra.mxu0 %v487_v9  ;;  %479 = vmatpush3.bf16.msra.mxu1 %v487_v9 }
  0x22   :  { %449 = vmatmul.mubr.bf16.vlgmr.msra.gmra.mxu0 %v490_v10  ;;  %457 = vmatmul.mubr.bf16.vlgmr.msra.gmra.mxu1 %v491_v11 }
  0x23   :  { %452 = vmatprep.mubr.bf16.mxu0 %v492_v12  ;;  %460 = vmatprep.mubr.bf16.mxu1 %v493_v13 }
  0x2a   :  { %453 = vmatmul.mubr.bf16.gmra.mxu0 %v494_v14  ;;  %461 = vmatmul.mubr.bf16.gmra.mxu1 %v495_v15 }
  0xe2   :  { %v450_v16 = vpop.f32.mrf.mxu0  ;;  %v458_v17 = vpop.f32.mrf.mxu1 }
  0xe4   :  { %v174_v18 = vpop.f32.mrf.mxu0  ;;  %v206_v19 = vpop.f32.mrf.mxu1 }
  0xe6   :  { %v451_v20 = vpop.f32.mrf.mxu0  ;;  %v459_v21 = vpop.f32.mrf.mxu1 }
  0xe7   :  { %v377_v22 = vpack.c.bf16 %v451_v20, %v450_v16  ;;  %v397_v23 = vpack.c.bf16 %v459_v21, %v458_v17 }
  0xe8   :  { %v177_v24 = vpop.f32.mrf.mxu0  ;;  %v209_v25 = vpop.f32.mrf.mxu1 }
  0xe9   :  { %409 = vst [vmem:[%s585_s2 + $0x8] sm:$0xff] %v377_v22   ;;  %413 = vst [vmem:[%s585_s2 + $0x28] sm:$0xff] %v397_v23   ;;  %v372_v26 = vpack.c.bf16 %v177_v24, %v174_v18  ;;  %v392_v27 = vpack.c.bf16 %v209_v25, %v206_v19 }
  0xea   :  { %v454_v28 = vpop.f32.mrf.mxu0  ;;  %v462_v29 = vpop.f32.mrf.mxu1 }
  0xeb   :  { %373 = vst [vmem:[%s585_s2] sm:$0xff] %v372_v26   ;;  %412 = vst [vmem:[%s585_s2 + $0x20] sm:$0xff] %v392_v27  }
  0xec   :  { %v190_v30 = vpop.f32.mrf.mxu0  ;;  %v222_v31 = vpop.f32.mrf.mxu1 }
  0xee   :  { %v455_v32 = vpop.f32.mrf.mxu0  ;;  %v463_v33 = vpop.f32.mrf.mxu1 }
  0xef   :  { %v387_v34 = vpack.c.bf16 %v455_v32, %v454_v28  ;;  %v407_v35 = vpack.c.bf16 %v463_v33, %v462_v29 }
  0xf0   :  { %v193_v36 = vpop.f32.mrf.mxu0  ;;  %v225_v37 = vpop.f32.mrf.mxu1 }
  0xf1   :  { %411 = vst [vmem:[%s585_s2 + $0x18] sm:$0xff] %v387_v34   ;;  %415 = vst [vmem:[%s585_s2 + $0x38] sm:$0xff] %v407_v35   ;;  %v382_v38 = vpack.c.bf16 %v193_v36, %v190_v30  ;;  %v402_v39 = vpack.c.bf16 %v225_v37, %v222_v31 }
  0xf3   :  { %410 = vst [vmem:[%s585_s2 + $0x10] sm:$0xff] %v382_v38   ;;  %414 = vst [vmem:[%s585_s2 + $0x30] sm:$0xff] %v402_v39  }

// kernel: gnn_forward.9
= control target key start
LH: loop header
LB: loop body
LE: loop exit
PB: predicated region body
PF: predicated region fallthrough
CT: control target
= control target key end

     0   :  { %s422_s0 = inlined_call_operand.vmem [shape: bf16[128,128], index: 0, kind: input, shape index: {}]   ;;  %s423_s1 = inlined_call_operand.vmem [shape: f32[1,128], index: 1, kind: input, shape index: {}]   ;;  %s424_s2 = inlined_call_operand.vmem [shape: f32[1,128], index: 2, kind: input, shape index: {}]   ;;  %s425_s3 = inlined_call_operand.vmem [shape: bf16[128,128], index: 3, kind: output, shape index: {}]  }
   0x1   :  { %v227_v0 = vld [vmem:[%s422_s0] sm:$0xff]   ;;  %v298_v4 = vld [vmem:[%s422_s0 + $0x8] sm:$0xff]   ;;  %v299_v5 = vld [vmem:[%s422_s0 + $0x10] sm:$0xff]  }
   0x2   :  { %v338_v1 = vld [vmem:[%s423_s1] ss:$0 sm:$0xff]  ;;  %v228_v2 = vunpack.c.l.bf16 %v227_v0  ;;  %v229_v3 = vunpack.c.h.bf16 %v227_v0  ;;  %v300_v6 = vld [vmem:[%s422_s0 + $0x18] sm:$0xff]   ;;  %v232_v8 = vunpack.c.l.bf16 %v298_v4  ;;  %v233_v9 = vunpack.c.h.bf16 %v298_v4  ;;  %v302_v33 = vld [vmem:[%s422_s0 + $0x28] sm:$0xff]  }
   0x3   :  { %v352_v7 = vld [vmem:[%s424_s2] ss:$0 sm:$0xff]  ;;  %v236_v10 = vunpack.c.l.bf16 %v299_v5  ;;  %v237_v11 = vunpack.c.h.bf16 %v299_v5  ;;  %v240_v14 = vunpack.c.l.bf16 %v300_v6  ;;  %v241_v15 = vunpack.c.h.bf16 %v300_v6  ;;  %v303_v38 = vld [vmem:[%s422_s0 + $0x30] sm:$0xff]   ;;  %v304_v43 = vld [vmem:[%s422_s0 + $0x38] sm:$0xff]  }
   0x4   :  { %v53_v12 = vsub.f32 %v228_v2, %v338_v1  ;;  %v54_v13 = vsub.f32 %v229_v3, %v338_v1  ;;  %v55_v16 = vsub.f32 %v232_v8, %v338_v1  ;;  %v56_v17 = vsub.f32 %v233_v9, %v338_v1  ;;  %v301_v28 = vld [vmem:[%s422_s0 + $0x20] sm:$0xff]  }
   0x5   :  { %v57_v18 = vsub.f32 %v236_v10, %v338_v1  ;;  %v58_v19 = vsub.f32 %v237_v11, %v338_v1  ;;  %v59_v22 = vsub.f32 %v240_v14, %v338_v1  ;;  %v60_v23 = vsub.f32 %v241_v15, %v338_v1 }
   0x6   :  { %v76_v20 = vmul.f32 %v352_v7, %v53_v12  ;;  %v77_v21 = vmul.f32 %v352_v7, %v54_v13  ;;  %v78_v24 = vmul.f32 %v352_v7, %v55_v16  ;;  %v79_v25 = vmul.f32 %v352_v7, %v56_v17 }
   0x7   :  { %v80_v26 = vmul.f32 %v352_v7, %v57_v18  ;;  %v81_v27 = vmul.f32 %v352_v7, %v58_v19  ;;  %v82_v31 = vmul.f32 %v352_v7, %v59_v22  ;;  %v83_v32 = vmul.f32 %v352_v7, %v60_v23 }
   0x8   :  { %v92_v29 = vmax.f32 %v76_v20, 0.0  ;;  %v93_v30 = vmax.f32 %v77_v21, 0.0  ;;  %v94_v34 = vmax.f32 %v78_v24, 0.0  ;;  %v95_v35 = vmax.f32 %v79_v25, 0.0 }
   0x9   :  { %v96_v36 = vmax.f32 %v80_v26, 0.0  ;;  %v97_v37 = vmax.f32 %v81_v27, 0.0  ;;  %v98_v40 = vmax.f32 %v82_v31, 0.0  ;;  %v99_v41 = vmax.f32 %v83_v32, 0.0 }
   0xa   :  { %v261_v39 = vpack.c.bf16 %v93_v30, %v92_v29  ;;  %v244_v42 = vunpack.c.l.bf16 %v301_v28  ;;  %v266_v44 = vpack.c.bf16 %v95_v35, %v94_v34  ;;  %v245_v46 = vunpack.c.h.bf16 %v301_v28 }
   0xb   :  { %v271_v45 = vpack.c.bf16 %v97_v37, %v96_v36  ;;  %v248_v47 = vunpack.c.l.bf16 %v302_v33  ;;  %v276_v48 = vpack.c.bf16 %v99_v41, %v98_v40  ;;  %v249_v50 = vunpack.c.h.bf16 %v302_v33 }
   0xc   :  { %262 = vst [vmem:[%s425_s3] sm:$0xff] %v261_v39   ;;  %v61_v49 = vsub.f32 %v244_v42, %v338_v1  ;;  %v252_v51 = vunpack.c.l.bf16 %v303_v38  ;;  %305 = vst [vmem:[%s425_s3 + $0x8] sm:$0xff] %v266_v44   ;;  %v62_v52 = vsub.f32 %v245_v46, %v338_v1  ;;  %v253_v54 = vunpack.c.h.bf16 %v303_v38 }
   0xd   :  { %306 = vst [vmem:[%s425_s3 + $0x10] sm:$0xff] %v271_v45   ;;  %v63_v53 = vsub.f32 %v248_v47, %v338_v1  ;;  %v256_v55 = vunpack.c.l.bf16 %v304_v43  ;;  %307 = vst [vmem:[%s425_s3 + $0x18] sm:$0xff] %v276_v48   ;;  %v64_v57 = vsub.f32 %v249_v50, %v338_v1  ;;  %v257_v59 = vunpack.c.h.bf16 %v304_v43 }
   0xe   :  { %v84_v56 = vmul.f32 %v352_v7, %v61_v49  ;;  %v65_v58 = vsub.f32 %v252_v51, %v338_v1  ;;  %v85_v60 = vmul.f32 %v352_v7, %v62_v52  ;;  %v66_v62 = vsub.f32 %v253_v54, %v338_v1 }
   0xf   :  { %v86_v61 = vmul.f32 %v352_v7, %v63_v53  ;;  %v67_v63 = vsub.f32 %v256_v55, %v338_v1  ;;  %v87_v2 = vmul.f32 %v352_v7, %v64_v57  ;;  %v68_v4 = vsub.f32 %v257_v59, %v338_v1 }
  0x10   :  { %v100_v0 = vmax.f32 %v84_v56, 0.0  ;;  %v88_v3 = vmul.f32 %v352_v7, %v65_v58  ;;  %v101_v5 = vmax.f32 %v85_v60, 0.0  ;;  %v89_v8 = vmul.f32 %v352_v7, %v66_v62 }
  0x11   :  { %v102_v6 = vmax.f32 %v86_v61, 0.0  ;;  %v90_v9 = vmul.f32 %v352_v7, %v67_v63  ;;  %v103_v10 = vmax.f32 %v87_v2, 0.0  ;;  %v91_v12 = vmul.f32 %v352_v7, %v68_v4 }
  0x12   :  { %v104_v11 = vmax.f32 %v88_v3, 0.0  ;;  %v281_v13 = vpack.c.bf16 %v101_v5, %v100_v0  ;;  %v105_v14 = vmax.f32 %v89_v8, 0.0 }
  0x13   :  { %v106_v15 = vmax.f32 %v90_v9, 0.0  ;;  %v286_v16 = vpack.c.bf16 %v103_v10, %v102_v6  ;;  %v107_v17 = vmax.f32 %v91_v12, 0.0 }
  0x14   :  { %308 = vst [vmem:[%s425_s3 + $0x20] sm:$0xff] %v281_v13   ;;  %v291_v1 = vpack.c.bf16 %v105_v14, %v104_v11 }
  0x15   :  { %309 = vst [vmem:[%s425_s3 + $0x28] sm:$0xff] %v286_v16   ;;  %v296_v18 = vpack.c.bf16 %v107_v17, %v106_v15 }
  0x16   :  { %310 = vst [vmem:[%s425_s3 + $0x30] sm:$0xff] %v291_v1  }
  0x17   :  { %311 = vst [vmem:[%s425_s3 + $0x38] sm:$0xff] %v296_v18  }

// kernel: gnn_forward.13
= control target key start
LH: loop header
LB: loop body
LE: loop exit
PB: predicated region body
PF: predicated region fallthrough
CT: control target
= control target key end

     0   :  { %s483_s1 = inlined_call_operand.vmem [shape: bf16[128,128], index: 1, kind: input, shape index: {}]   ;;  %s484_s0 = inlined_call_operand.vmem [shape: bf16[128,128], index: 0, kind: input, shape index: {}]   ;;  %s485_s2 = inlined_call_operand.vmem [shape: f32[1,128], index: 2, kind: input, shape index: {}]   ;;  %s486_s3 = inlined_call_operand.vmem [shape: f32[128,128], index: 3, kind: output, shape index: {}]  }
   0x1   :  { %v348_v0 = vld [vmem:[%s483_s1 + $0x38] sm:$0xff]   ;;  %v349_v1 = vld [vmem:[%s483_s1 + $0x30] sm:$0xff]   ;;  %v350_v2 = vld [vmem:[%s483_s1 + $0x28] sm:$0xff]  }
   0x2   :  { %300 = vmatprep.subr.bf16.mxu0 %v348_v0  ;;  %332 = vmatprep.subr.bf16.mxu1 %v348_v0  ;;  %v351_v3 = vld [vmem:[%s483_s1 + $0x20] sm:$0xff]   ;;  %v352_v6 = vld [vmem:[%s483_s1 + $0x18] sm:$0xff]   ;;  %v353_v7 = vld [vmem:[%s483_s1 + $0x10] sm:$0xff]  }
   0x3   :  { %301 = vmatpush3.bf16.msra.mxu0 %v348_v0  ;;  %340 = vmatpush3.bf16.msra.mxu1 %v348_v0  ;;  %v356_v4 = vld [vmem:[%s484_s0] sm:$0xff]   ;;  %v354_v8 = vld [vmem:[%s483_s1 + $0x8] sm:$0xff]   ;;  %v360_v12 = vld [vmem:[%s484_s0 + $0x10] sm:$0xff]  }
   0x4   :  { %302 = vmatprep.subr.bf16.mxu0 %v349_v1  ;;  %333 = vmatprep.subr.bf16.mxu1 %v349_v1  ;;  %v357_v5 = vld [vmem:[%s484_s0 + $0x20] sm:$0xff]   ;;  %v358_v10 = vld [vmem:[%s484_s0 + $0x8] sm:$0xff]   ;;  %v361_v13 = vld [vmem:[%s484_s0 + $0x30] sm:$0xff]  }
   0x5   :  { %316 = vmatprep.mubr.bf16.mxu0 %v356_v4  ;;  %324 = vmatprep.mubr.bf16.mxu1 %v357_v5  ;;  %v355_v9 = vld [vmem:[%s483_s1] sm:$0xff]   ;;  %v359_v11 = vld [vmem:[%s484_s0 + $0x28] sm:$0xff]   ;;  %v362_v14 = vld [vmem:[%s484_s0 + $0x18] sm:$0xff]  }
   0x6   :  { %v363_v15 = vld [vmem:[%s484_s0 + $0x38] sm:$0xff]   ;;  %v267_v16 = vld [vmem:[%s485_s2] ss:$0 sm:$0xff] }
   0x7   :  { %303 = vmatpush3.bf16.msra.mxu0 %v349_v1  ;;  %341 = vmatpush3.bf16.msra.mxu1 %v349_v1 }
   0x8   :  { %304 = vmatprep.subr.bf16.mxu0 %v350_v2  ;;  %334 = vmatprep.subr.bf16.mxu1 %v350_v2 }
   0xb   :  { %305 = vmatpush3.bf16.msra.mxu0 %v350_v2  ;;  %342 = vmatpush3.bf16.msra.mxu1 %v350_v2 }
   0xc   :  { %306 = vmatprep.subr.bf16.mxu0 %v351_v3  ;;  %335 = vmatprep.subr.bf16.mxu1 %v351_v3 }
   0xf   :  { %307 = vmatpush3.bf16.msra.mxu0 %v351_v3  ;;  %343 = vmatpush3.bf16.msra.mxu1 %v351_v3 }
  0x10   :  { %308 = vmatprep.subr.bf16.mxu0 %v352_v6  ;;  %336 = vmatprep.subr.bf16.mxu1 %v352_v6 }
  0x13   :  { %309 = vmatpush3.bf16.msra.mxu0 %v352_v6  ;;  %344 = vmatpush3.bf16.msra.mxu1 %v352_v6 }
  0x14   :  { %310 = vmatprep.subr.bf16.mxu0 %v353_v7  ;;  %337 = vmatprep.subr.bf16.mxu1 %v353_v7 }
  0x17   :  { %311 = vmatpush3.bf16.msra.mxu0 %v353_v7  ;;  %345 = vmatpush3.bf16.msra.mxu1 %v353_v7 }
  0x18   :  { %312 = vmatprep.subr.bf16.mxu0 %v354_v8  ;;  %338 = vmatprep.subr.bf16.mxu1 %v354_v8 }
  0x1b   :  { %313 = vmatpush3.bf16.msra.mxu0 %v354_v8  ;;  %346 = vmatpush3.bf16.msra.mxu1 %v354_v8 }
  0x1c   :  { %314 = vmatprep.subr.bf16.mxu0 %v355_v9  ;;  %339 = vmatprep.subr.bf16.mxu1 %v355_v9 }
  0x1f   :  { %315 = vmatpush3.bf16.msra.mxu0 %v355_v9  ;;  %347 = vmatpush3.bf16.msra.mxu1 %v355_v9 }
  0x22   :  { %317 = vmatmul.mubr.bf16.vlgmr.msra.gmra.mxu0 %v358_v10  ;;  %325 = vmatmul.mubr.bf16.vlgmr.msra.gmra.mxu1 %v359_v11 }
  0x23   :  { %320 = vmatprep.mubr.bf16.mxu0 %v360_v12  ;;  %328 = vmatprep.mubr.bf16.mxu1 %v361_v13 }
  0x2a   :  { %321 = vmatmul.mubr.bf16.gmra.mxu0 %v362_v14  ;;  %329 = vmatmul.mubr.bf16.gmra.mxu1 %v363_v15 }
  0xe2   :  { %v318_v17 = vpop.f32.mrf.mxu0  ;;  %v326_v18 = vpop.f32.mrf.mxu1 }
  0xe3   :  { %v193_v19 = vadd.f32 %v318_v17, %v267_v16  ;;  %v225_v20 = vadd.f32 %v326_v18, %v267_v16 }
  0xe4   :  { %v184_v21 = vpop.f32.mrf.mxu0  ;;  %v216_v22 = vpop.f32.mrf.mxu1 }
  0xe5   :  { %249 = vst [vmem:[%s486_s3 + $0x10] sm:$0xff] %v193_v19  ;;  %257 = vst [vmem:[%s486_s3 + $0x50] sm:$0xff] %v225_v20  ;;  %v185_v23 = vadd.f32 %v267_v16, %v184_v21  ;;  %v217_v24 = vadd.f32 %v267_v16, %v216_v22 }
  0xe6   :  { %v319_v25 = vpop.f32.mrf.mxu0  ;;  %v327_v26 = vpop.f32.mrf.mxu1 }
  0xe7   :  { %247 = vst [vmem:[%s486_s3] sm:$0xff] %v185_v23  ;;  %255 = vst [vmem:[%s486_s3 + $0x40] sm:$0xff] %v217_v24  ;;  %v196_v27 = vadd.f32 %v319_v25, %v267_v16  ;;  %v228_v28 = vadd.f32 %v327_v26, %v267_v16 }
  0xe8   :  { %v187_v29 = vpop.f32.mrf.mxu0  ;;  %v219_v30 = vpop.f32.mrf.mxu1 }
  0xe9   :  { %250 = vst [vmem:[%s486_s3 + $0x18] sm:$0xff] %v196_v27  ;;  %258 = vst [vmem:[%s486_s3 + $0x58] sm:$0xff] %v228_v28  ;;  %v188_v31 = vadd.f32 %v267_v16, %v187_v29  ;;  %v220_v32 = vadd.f32 %v267_v16, %v219_v30 }
  0xea   :  { %v322_v33 = vpop.f32.mrf.mxu0  ;;  %v330_v34 = vpop.f32.mrf.mxu1 }
  0xeb   :  { %248 = vst [vmem:[%s486_s3 + $0x8] sm:$0xff] %v188_v31  ;;  %256 = vst [vmem:[%s486_s3 + $0x48] sm:$0xff] %v220_v32  ;;  %v209_v35 = vadd.f32 %v322_v33, %v267_v16  ;;  %v241_v36 = vadd.f32 %v330_v34, %v267_v16 }
  0xec   :  { %v200_v37 = vpop.f32.mrf.mxu0  ;;  %v232_v38 = vpop.f32.mrf.mxu1 }
  0xed   :  { %253 = vst [vmem:[%s486_s3 + $0x30] sm:$0xff] %v209_v35  ;;  %261 = vst [vmem:[%s486_s3 + $0x70] sm:$0xff] %v241_v36  ;;  %v201_v39 = vadd.f32 %v267_v16, %v200_v37  ;;  %v233_v40 = vadd.f32 %v267_v16, %v232_v38 }
  0xee   :  { %v323_v41 = vpop.f32.mrf.mxu0  ;;  %v331_v42 = vpop.f32.mrf.mxu1 }
  0xef   :  { %251 = vst [vmem:[%s486_s3 + $0x20] sm:$0xff] %v201_v39  ;;  %259 = vst [vmem:[%s486_s3 + $0x60] sm:$0xff] %v233_v40  ;;  %v212_v43 = vadd.f32 %v323_v41, %v267_v16  ;;  %v244_v44 = vadd.f32 %v331_v42, %v267_v16 }
  0xf0   :  { %v203_v45 = vpop.f32.mrf.mxu0  ;;  %v235_v46 = vpop.f32.mrf.mxu1 }
  0xf1   :  { %254 = vst [vmem:[%s486_s3 + $0x38] sm:$0xff] %v212_v43  ;;  %262 = vst [vmem:[%s486_s3 + $0x78] sm:$0xff] %v244_v44  ;;  %v204_v47 = vadd.f32 %v267_v16, %v203_v45  ;;  %v236_v48 = vadd.f32 %v267_v16, %v235_v46 }
  0xf3   :  { %252 = vst [vmem:[%s486_s3 + $0x28] sm:$0xff] %v204_v47  ;;  %260 = vst [vmem:[%s486_s3 + $0x68] sm:$0xff] %v236_v48 }

// kernel: gnn_forward.8
= control target key start
LH: loop header
LB: loop body
LE: loop exit
PB: predicated region body
PF: predicated region fallthrough
CT: control target
= control target key end

     0   :  { %vm494_vm0 = vcmask 7168   ;;  %v826_v1 = vmov 0.0   ;;  %s827_s17 = smov 1.0   ;;  %s981_s1 = inlined_call_operand.vmem [shape: bf16[128,128], index: 1, kind: input, shape index: {}]   ;;  %s982_s0 = inlined_call_operand.vmem [shape: bf16[128,128], index: 0, kind: input, shape index: {}]   ;;  %s983_s2 = inlined_call_operand.vmem [shape: bf16[128,128], index: 2, kind: output, shape index: {0}]   ;;  %s984_s3 = inlined_call_operand.vmem [shape: f32[1,2,128], index: 3, kind: output, shape index: {1}]  }
   0x1   :  { %v808_v0 = vld [vmem:[%s981_s1 + $0x38] sm:$0xff]   ;;  %v495_v2 = vsel %vm494_vm0, 1.0, %v826_v1  ;;  %v809_v4 = vld [vmem:[%s981_s1 + $0x30] sm:$0xff]   ;;  %v810_v5 = vld [vmem:[%s981_s1 + $0x28] sm:$0xff]  }
   0x2   :  { %v497_v3 = vadd.f32 %v495_v2, %v495_v2  ;;  %754 = vmatprep.subr.bf16.mxu0 %v808_v0  ;;  %786 = vmatprep.subr.bf16.mxu1 %v808_v0  ;;  %v811_v6 = vld [vmem:[%s981_s1 + $0x20] sm:$0xff]   ;;  %v812_v8 = vld [vmem:[%s981_s1 + $0x18] sm:$0xff]   ;;  %v813_v10 = vld [vmem:[%s981_s1 + $0x10] sm:$0xff]  }
   0x3   :  { %755 = vmatpush3.bf16.msra.mxu0 %v808_v0  ;;  %794 = vmatpush3.bf16.msra.mxu1 %v808_v0  ;;  %v816_v7 = vld [vmem:[%s982_s0] sm:$0xff]   ;;  %v814_v11 = vld [vmem:[%s981_s1 + $0x8] sm:$0xff]   ;;  %v818_v14 = vld [vmem:[%s982_s0 + $0x10] sm:$0xff]  }
   0x4   :  { %526 = vadd.xlane.f32.xlu0 %v497_v3  ;;  %756 = vmatprep.subr.bf16.mxu0 %v809_v4  ;;  %v820_v9 = vld [vmem:[%s982_s0 + $0x20] sm:$0xff]   ;;  %v817_v13 = vld [vmem:[%s982_s0 + $0x8] sm:$0xff]   ;;  %v822_v16 = vld [vmem:[%s982_s0 + $0x30] sm:$0xff]  }
   0x5   :  { %787 = vmatprep.subr.bf16.mxu1 %v809_v4  ;;  %770 = vmatprep.mubr.bf16.mxu0 %v816_v7  ;;  %v815_v12 = vld [vmem:[%s981_s1] sm:$0xff]   ;;  %v821_v15 = vld [vmem:[%s982_s0 + $0x28] sm:$0xff]   ;;  %v819_v17 = vld [vmem:[%s982_s0 + $0x18] sm:$0xff]  }
   0x6   :  { %778 = vmatprep.mubr.bf16.mxu1 %v820_v9  ;;  %v823_v18 = vld [vmem:[%s982_s0 + $0x38] sm:$0xff]  }
   0x7   :  { %757 = vmatpush3.bf16.msra.mxu0 %v809_v4  ;;  %795 = vmatpush3.bf16.msra.mxu1 %v809_v4 }
   0x8   :  { %758 = vmatprep.subr.bf16.mxu0 %v810_v5  ;;  %788 = vmatprep.subr.bf16.mxu1 %v810_v5 }
   0xb   :  { %759 = vmatpush3.bf16.msra.mxu0 %v810_v5  ;;  %796 = vmatpush3.bf16.msra.mxu1 %v810_v5 }
   0xc   :  { %760 = vmatprep.subr.bf16.mxu0 %v811_v6  ;;  %789 = vmatprep.subr.bf16.mxu1 %v811_v6 }
   0xf   :  { %761 = vmatpush3.bf16.msra.mxu0 %v811_v6  ;;  %797 = vmatpush3.bf16.msra.mxu1 %v811_v6 }
  0x10   :  { %762 = vmatprep.subr.bf16.mxu0 %v812_v8  ;;  %790 = vmatprep.subr.bf16.mxu1 %v812_v8 }
  0x13   :  { %763 = vmatpush3.bf16.msra.mxu0 %v812_v8  ;;  %798 = vmatpush3.bf16.msra.mxu1 %v812_v8 }
  0x14   :  { %764 = vmatprep.subr.bf16.mxu0 %v813_v10  ;;  %791 = vmatprep.subr.bf16.mxu1 %v813_v10 }
  0x17   :  { %765 = vmatpush3.bf16.msra.mxu0 %v813_v10  ;;  %799 = vmatpush3.bf16.msra.mxu1 %v813_v10 }
  0x18   :  { %766 = vmatprep.subr.bf16.mxu0 %v814_v11  ;;  %792 = vmatprep.subr.bf16.mxu1 %v814_v11 }
  0x1b   :  { %767 = vmatpush3.bf16.msra.mxu0 %v814_v11  ;;  %800 = vmatpush3.bf16.msra.mxu1 %v814_v11 }
  0x1c   :  { %768 = vmatprep.subr.bf16.mxu0 %v815_v12  ;;  %793 = vmatprep.subr.bf16.mxu1 %v815_v12 }
  0x1f   :  { %769 = vmatpush3.bf16.msra.mxu0 %v815_v12  ;;  %801 = vmatpush3.bf16.msra.mxu1 %v815_v12 }
  0x22   :  { %771 = vmatmul.mubr.bf16.vlgmr.msra.gmra.mxu0 %v817_v13  ;;  %779 = vmatmul.mubr.bf16.vlgmr.msra.gmra.mxu1 %v821_v15 }
  0x23   :  { %774 = vmatprep.mubr.bf16.mxu0 %v818_v14  ;;  %782 = vmatprep.mubr.bf16.mxu1 %v822_v16 }
  0x2a   :  { %775 = vmatmul.mubr.bf16.gmra.mxu0 %v819_v17  ;;  %783 = vmatmul.mubr.bf16.gmra.mxu1 %v823_v18 }
  0x8d   :  { %v527_v19 = vpop.xlane.xlu0 %526 }
  0x8e   :  { %v528_v20 = vrot.slane %v527_v19, 4 }
  0x90   :  { %v529_v21 = vadd.f32 %v528_v20, %v527_v19 }
  0x92   :  { %v530_v22 = vrot.slane %v529_v21, 2 }
  0x94   :  { %v531_v23 = vadd.f32 %v530_v22, %v529_v21 }
  0x96   :  { %v532_v24 = vrot.slane %v531_v23, 1 }
  0x98   :  { %v533_v25 = vadd.f32 %v532_v24, %v531_v23 }
  0x9a   :  { %802 = vpush %v533_v25 }
  0xcb   :  { %s803_s16 = spop %802 }
  0xcc   :  { %s535_s18 = smax.f32 %s827_s17, %s803_s16 }
  0xcd   :  { %v557_v26 = vstv %s535_s18 }
  0xce   :  { %824 = vrcp.f32 %v557_v26 }
  0xdb   :  { %v825_v27 = vpop.eup %824 }
  0xdc   :  { %804 = vpush %v825_v27 }
  0xe2   :  { %v896_v28 = vpop.f32.mrf.mxu0  ;;  %v898_v29 = vpop.f32.mrf.mxu1 }
  0xe4   :  { %v217_v30 = vpop.f32.mrf.mxu0  ;;  %v900_v31 = vpop.f32.mrf.mxu1 }
  0xe6   :  { %v902_v32 = vpop.f32.mrf.mxu0  ;;  %v906_v34 = vpop.f32.mrf.mxu1 }
  0xe7   :  { %v699_v33 = vpack.c.bf16 %v902_v32, %v896_v28  ;;  %v719_v36 = vpack.c.bf16 %v906_v34, %v898_v29 }
  0xe8   :  { %v220_v35 = vpop.f32.mrf.mxu0  ;;  %v913_v39 = vpop.f32.mrf.mxu1 }
  0xe9   :  { %731 = vst [vmem:[%s983_s2 + $0x8] sm:$0xff] %v699_v33   ;;  %v694_v37 = vpack.c.bf16 %v220_v35, %v217_v30  ;;  %v536_v38 = vadd.f32 %v220_v35, %v217_v30  ;;  %735 = vst [vmem:[%s983_s2 + $0x28] sm:$0xff] %v719_v36   ;;  %v714_v41 = vpack.c.bf16 %v913_v39, %v900_v31 }
  0xea   :  { %v915_v40 = vpop.f32.mrf.mxu0  ;;  %v926_v43 = vpop.f32.mrf.mxu1 }
  0xeb   :  { %695 = vst [vmem:[%s983_s2] sm:$0xff] %v694_v37   ;;  %v537_v42 = vadd.f32 %v896_v28, %v536_v38  ;;  %734 = vst [vmem:[%s983_s2 + $0x20] sm:$0xff] %v714_v41  }
  0xec   :  { %v233_v44 = vpop.f32.mrf.mxu0  ;;  %v932_v46 = vpop.f32.mrf.mxu1 }
  0xed   :  { %v538_v45 = vadd.f32 %v902_v32, %v537_v42 }
  0xee   :  { %v777_v47 = vpop.f32.mrf.mxu0  ;;  %v935_v50 = vpop.f32.mrf.mxu1 }
  0xef   :  { %v539_v48 = vadd.f32 %v538_v45, %v233_v44  ;;  %v709_v49 = vpack.c.bf16 %v777_v47, %v915_v40  ;;  %v729_v52 = vpack.c.bf16 %v935_v50, %v926_v43 }
  0xf0   :  { %v236_v51 = vpop.f32.mrf.mxu0  ;;  %v942_v55 = vpop.f32.mrf.mxu1 }
  0xf1   :  { %733 = vst [vmem:[%s983_s2 + $0x18] sm:$0xff] %v709_v49   ;;  %v704_v53 = vpack.c.bf16 %v236_v51, %v233_v44  ;;  %v540_v54 = vadd.f32 %v539_v48, %v236_v51  ;;  %737 = vst [vmem:[%s983_s2 + $0x38] sm:$0xff] %v729_v52   ;;  %v724_v56 = vpack.c.bf16 %v942_v55, %v932_v46 }
  0xf3   :  { %732 = vst [vmem:[%s983_s2 + $0x10] sm:$0xff] %v704_v53   ;;  %v541_v57 = vadd.f32 %v915_v40, %v540_v54  ;;  %736 = vst [vmem:[%s983_s2 + $0x30] sm:$0xff] %v724_v56  }
  0xf5   :  { %v542_v58 = vadd.f32 %v777_v47, %v541_v57 }
  0xf7   :  { %v543_v59 = vadd.f32 %v542_v58, %v900_v31 }
  0xf9   :  { %v544_v60 = vadd.f32 %v543_v59, %v913_v39 }
  0xfb   :  { %v545_v61 = vadd.f32 %v898_v29, %v544_v60 }
  0xfd   :  { %v546_v62 = vadd.f32 %v906_v34, %v545_v61 }
  0xff   :  { %v547_v63 = vadd.f32 %v546_v62, %v932_v46 }
 0x101   :  { %v548_v0 = vadd.f32 %v547_v63, %v942_v55 }
 0x103   :  { %v549_v1 = vadd.f32 %v926_v43, %v548_v0 }
 0x105   :  { %v550_v2 = vadd.f32 %v935_v50, %v549_v1 }
 0x107   :  { %v551_v3 = vrot.slane %v550_v2, 4 }
 0x109   :  { %v552_v4 = vadd.f32 %v551_v3, %v550_v2 }
 0x10b   :  { %v553_v5 = vrot.slane %v552_v4, 2 }
 0x10d   :  { %v554_v6 = vadd.f32 %v553_v5, %v552_v4  ;;  %s805_s2 = spop %804 }
 0x10e   :  { %v560_v9 = vstv %s805_s2 }
 0x10f   :  { %v555_v7 = vrot.slane %v554_v6, 1 }
 0x111   :  { %v556_v8 = vadd.f32 %v555_v7, %v554_v6 }
 0x113   :  { %v561_v10 = vmul.f32 %v560_v9, %v556_v8  ;;  %631 = vst [vmem:[%s984_s3] sm:$0x1] %v556_v8 }
 0x115   :  { %v564_v11 = vsub.f32 %v896_v28, %v561_v10  ;;  %v562_v12 = vsub.f32 %v217_v30, %v561_v10  ;;  %v563_v13 = vsub.f32 %v220_v35, %v561_v10  ;;  %v565_v14 = vsub.f32 %v902_v32, %v561_v10 }
 0x116   :  { %v566_v16 = vsub.f32 %v233_v44, %v561_v10  ;;  %v567_v19 = vsub.f32 %v236_v51, %v561_v10  ;;  %v568_v22 = vsub.f32 %v915_v40, %v561_v10  ;;  %v569_v25 = vsub.f32 %v777_v47, %v561_v10 }
 0x117   :  { %v580_v15 = vmul.f32 0.0, %v564_v11  ;;  %v594_v17 = vmul.f32 %v562_v12, %v562_v12  ;;  %v595_v18 = vmul.f32 %v563_v13, %v563_v13  ;;  %v581_v20 = vmul.f32 0.0, %v565_v14 }
 0x118   :  { %v582_v23 = vmul.f32 0.0, %v566_v16  ;;  %v583_v26 = vmul.f32 0.0, %v567_v19  ;;  %v570_v28 = vsub.f32 %v900_v31, %v561_v10  ;;  %v584_v30 = vmul.f32 0.0, %v568_v22 }
 0x119   :  { %v596_v21 = vmul.f32 %v580_v15, %v580_v15  ;;  %v610_v24 = vadd.f32 %v595_v18, %v594_v17  ;;  %v597_v27 = vmul.f32 %v581_v20, %v581_v20  ;;  %v571_v36 = vsub.f32 %v913_v39, %v561_v10 }
 0x11a   :  { %v598_v35 = vmul.f32 %v582_v23, %v582_v23  ;;  %v585_v37 = vmul.f32 0.0, %v569_v25  ;;  %v599_v38 = vmul.f32 %v583_v26, %v583_v26  ;;  %v572_v42 = vsub.f32 %v898_v29, %v561_v10 }
 0x11b   :  { %v611_v33 = vadd.f32 %v610_v24, %v596_v21  ;;  %v586_v44 = vmul.f32 0.0, %v570_v28  ;;  %v600_v40 = vmul.f32 %v584_v30, %v584_v30  ;;  %v573_v47 = vsub.f32 %v906_v34, %v561_v10 }
 0x11c   :  { %v587_v48 = vmul.f32 0.0, %v571_v36  ;;  %v601_v49 = vmul.f32 %v585_v37, %v585_v37  ;;  %v574_v31 = vsub.f32 %v932_v46, %v561_v10  ;;  %v588_v52 = vmul.f32 0.0, %v572_v42 }
 0x11d   :  { %v612_v32 = vadd.f32 %v611_v33, %v597_v27  ;;  %v602_v53 = vmul.f32 %v586_v44, %v586_v44  ;;  %v575_v39 = vsub.f32 %v942_v55, %v561_v10  ;;  %v589_v56 = vmul.f32 0.0, %v573_v47 }
 0x11e   :  { %v603_v57 = vmul.f32 %v587_v48, %v587_v48  ;;  %v576_v29 = vsub.f32 %v926_v43, %v561_v10  ;;  %v590_v59 = vmul.f32 0.0, %v574_v31  ;;  %v604_v60 = vmul.f32 %v588_v52, %v588_v52 }
 0x11f   :  { %v613_v41 = vadd.f32 %v612_v32, %v598_v35  ;;  %v577_v34 = vsub.f32 %v935_v50, %v561_v10  ;;  %v591_v62 = vmul.f32 0.0, %v575_v39  ;;  %v605_v63 = vmul.f32 %v589_v56, %v589_v56 }
 0x120   :  { %v592_v1 = vmul.f32 0.0, %v576_v29  ;;  %v606_v46 = vmul.f32 %v590_v59, %v590_v59 }
 0x121   :  { %v614_v45 = vadd.f32 %v613_v41, %v599_v38  ;;  %v593_v3 = vmul.f32 0.0, %v577_v34  ;;  %v607_v4 = vmul.f32 %v591_v62, %v591_v62 }
 0x122   :  { %v608_v55 = vmul.f32 %v592_v1, %v592_v1 }
 0x123   :  { %v615_v51 = vadd.f32 %v614_v45, %v600_v40  ;;  %v609_v7 = vmul.f32 %v593_v3, %v593_v3 }
 0x125   :  { %v616_v54 = vadd.f32 %v615_v51, %v601_v49 }
 0x127   :  { %v617_v58 = vadd.f32 %v616_v54, %v602_v53 }
 0x129   :  { %v618_v61 = vadd.f32 %v617_v58, %v603_v57 }
 0x12b   :  { %v619_v0 = vadd.f32 %v618_v61, %v604_v60 }
 0x12d   :  { %v620_v2 = vadd.f32 %v619_v0, %v605_v63 }
 0x12f   :  { %v621_v5 = vadd.f32 %v620_v2, %v606_v46 }
 0x131   :  { %v622_v6 = vadd.f32 %v621_v5, %v607_v4 }
 0x133   :  { %v623_v8 = vadd.f32 %v622_v6, %v608_v55 }
 0x135   :  { %v624_v9 = vadd.f32 %v623_v8, %v609_v7 }
 0x137   :  { %v625_v43 = vrot.slane %v624_v9, 4 }
 0x139   :  { %v626_v11 = vadd.f32 %v625_v43, %v624_v9 }
 0x13b   :  { %v627_v12 = vrot.slane %v626_v11, 2 }
 0x13d   :  { %v628_v13 = vadd.f32 %v627_v12, %v626_v11 }
 0x13f   :  { %v629_v14 = vrot.slane %v628_v13, 1 }
 0x141   :  { %v630_v50 = vadd.f32 %v629_v14, %v628_v13 }
 0x143   :  { %632 = vst [vmem:[%s984_s3 + $0x1] sm:$0x1] %v630_v50 }

</bundles_post_ra>
